<compile_context>
chip_gen: v7x
topology: tpu7x:2x2x1
jax: 0.10.0
libtpu: 0.0.40
codegen_flags: <defaults>
</compile_context>

<pallas_src>
import jax
import jax.numpy as jnp
from jax import lax
from jax.experimental import pallas as pl
from jax.experimental.pallas import tpu as pltpu

NUM_CLASSES = 23
_LANE = 128
_MIN_TILES = 4  # aim for >= 4 spatial tiles so both v7x TCs get work


def _round_up(x, m):
    return ((x + m - 1) // m) * m


def _one_hot_kernel(tgt_ref, out_ref):
    # tgt_ref: (1, tile_n) int32 labels; out_ref: (NUM_CLASSES, tile_n) f32.
    t = tgt_ref[...]                                    # load label tile once
    t = jnp.where(t == -1, jnp.int32(1), t)             # target[target == -1] = 1
    c = out_ref.shape[0]
    # Tiny per-class iota; broadcasting against t does the (c, tile_n) expand
    # inside the compare — no full-tile int32 temp in VMEM.
    class_ids = lax.broadcasted_iota(jnp.int32, (c, 1), 0)
    out_ref[...] = jnp.where(class_ids == t, jnp.float32(1.0), jnp.float32(0.0))


def _pick_tile(n):
    """Per-chip spatial tile size (in pixels) and VMEM limit."""
    # Safe default (v7x: 64 MiB physical / 32 MiB scoped VMEM, 2 TCs/chip).
    cap = 32 * 1024
    vmem_limit = 32 * 1024 * 1024
    try:
        info = pltpu.get_tpu_info()
        vmem_cap = getattr(info, "vmem_capacity_bytes", 0)
        if vmem_cap >= 100 * 1024 * 1024:  # v5e / v6e: 128 MiB physical VMEM
            cap = 128 * 1024
            vmem_limit = 64 * 1024 * 1024
    except Exception:
        pass
    # Split into >= _MIN_TILES tiles when the image is big enough (megacore),
    # keep the tile lane-dense (multiple of 128) and at least one lane group.
    tile_n = _round_up(max(pl.cdiv(n, _MIN_TILES), _LANE), _LANE)
    tile_n = min(tile_n, cap)
    return tile_n, vmem_limit


def make_dummy_segmentation_model(target_image):
    """Mirrors DummySegmentationModel.__init__/forward.

    target_image: (H, W) integer label map.
    Returns forward(x) -> (1, NUM_CLASSES, H, W) float32 (x is ignored,
    exactly like the PyTorch module).
    """
    H, W = target_image.shape
    N = H * W

    tile_n, vmem_limit = _pick_tile(N)
    grid_n = pl.cdiv(N, tile_n)

    # Flattened, lane-dense label row.  No padding: the boundary block's
    # out-of-range reads are garbage but its out-of-range writes are masked
    # by Pallas, so nothing unmasked depends on them.
    labels = target_image.astype(jnp.int32).reshape(1, N)

    out_flat = pl.pallas_call(
        _one_hot_kernel,
        out_shape=jax.ShapeDtypeStruct((NUM_CLASSES, N), jnp.float32),
        grid=(grid_n,),
        in_specs=[pl.BlockSpec((1, tile_n), lambda j: (0, j))],
        out_specs=pl.BlockSpec((NUM_CLASSES, tile_n), lambda j: (0, j)),
        compiler_params=pltpu.CompilerParams(
            dimension_semantics=("parallel",),
            vmem_limit_bytes=vmem_limit,
        ),
        cost_estimate=pl.CostEstimate(
            flops=0,
            transcendentals=0,
            bytes_accessed=(NUM_CLASSES * 4 + 4) * N,
        ),
    )(labels)

    # (23, H*W) -> (1, 23, H, W): exact extent, so this is metadata-only.
    prediction = out_flat.reshape(1, NUM_CLASSES, H, W)

    def forward(x):
        # forward ignores x and returns the precomputed one-hot prediction,
        # exactly like the PyTorch module returning self.prediction.float().
        return prediction

    return forward


def _reference(target):
    # Pure-JAX reference mirroring the PyTorch module.
    t = jnp.where(target == -1, 1, target)
    ref = jax.nn.one_hot(t, NUM_CLASSES, dtype=jnp.float32)      # (H, W, C)
    return jnp.transpose(ref, (2, 0, 1))[None]                   # (1, C, H, W)


if __name__ == "__main__":
    key = jax.random.PRNGKey(0)

    # Two small deterministic cases: one lane-aligned (16x16) and one that
    # exercises the masked boundary block (15x17 -> 255 pixels).
    for (H, W) in [(16, 16), (15, 17)]:
        k1, k2, k3, key = jax.random.split(key, 4)
        target = jax.random.randint(k1, (H, W), minval=0, maxval=NUM_CLASSES,
                                    dtype=jnp.int32)
        neg_mask = jax.random.bernoulli(k2, p=0.1, shape=(H, W))
        target = jnp.where(neg_mask, jnp.int32(-1), target)

        # Dummy input image (ignored by forward, like in the PyTorch module).
        x = jax.random.normal(k3, (1, 3, H, W), dtype=jnp.float32)

        model_forward = make_dummy_segmentation_model(target)
        out = jax.block_until_ready(model_forward(x))

        ref = _reference(target)
        assert out.shape == (1, NUM_CLASSES, H, W), out.shape
        assert out.dtype == jnp.float32
        assert jnp.array_equal(out, ref), f"mismatch vs reference ({H}x{W})"

    print("KERNEL_OK")
</pallas_src>

<mosaic_0001>
module attributes {stable_mosaic.version = 11 : i64} {
  func.func @_one_hot_kernel(%arg0: i32, %arg1: memref<1x128xi32, #tpu.memory_space<vmem>>, %arg2: memref<23x128xf32, #tpu.memory_space<vmem>>) attributes {dimension_semantics = [#tpu.dimension_semantics<parallel>], iteration_bounds = array<i64: 2>, scalar_prefetch = 0 : i64, scratch_operands = 0 : i64, tpu.core_type = #tpu.core_type<tc>, window_params = [{transform_indices = @transform_0, window_bounds = array<i64: 1, 128>}, {transform_indices = @transform_1, window_bounds = array<i64: 23, 128>}]} {
    %c0 = arith.constant 0 : index
    %c0_0 = arith.constant 0 : index
    %0 = vector.load %arg1[%c0, %c0_0] : memref<1x128xi32, #tpu.memory_space<vmem>>, vector<1x128xi32>
    %c-1_i32 = arith.constant -1 : i32
    %1 = vector.broadcast %c-1_i32 : i32 to vector<1x128xi32>
    %2 = arith.cmpi eq, %0, %1 : vector<1x128xi32>
    %c1_i32 = arith.constant 1 : i32
    %3 = vector.broadcast %c1_i32 : i32 to vector<1x128xi32>
    %4 = arith.select %2, %3, %0 : vector<1x128xi1>, vector<1x128xi32>
    %5 = tpu.iota {dimensions = array<i32: 0>} : vector<23x1xi32>
    %6 = vector.broadcast %5 : vector<23x1xi32> to vector<23x128xi32>
    %7 = vector.broadcast %4 : vector<1x128xi32> to vector<23x128xi32>
    %8 = arith.cmpi eq, %6, %7 : vector<23x128xi32>
    %cst = arith.constant 1.000000e+00 : f32
    %cst_1 = arith.constant 0.000000e+00 : f32
    %9 = vector.broadcast %cst : f32 to vector<23x128xf32>
    %10 = vector.broadcast %cst_1 : f32 to vector<23x128xf32>
    %11 = arith.select %8, %9, %10 : vector<23x128xi1>, vector<23x128xf32>
    %c0_2 = arith.constant 0 : index
    %c0_3 = arith.constant 0 : index
    %12 = vector.load %arg2[%c0_2, %c0_3] : memref<23x128xf32, #tpu.memory_space<vmem>>, vector<23x128xf32>
    tpu.vector_store %arg2[%c0_2, %c0_3], %11 {strides = array<i32>} : memref<23x128xf32, #tpu.memory_space<vmem>>, vector<23x128xf32>,
    return
  }
  func.func @transform_0(%arg0: i32) -> (i32, i32) {
    %c0_i32 = arith.constant 0 : i32
    %c0_i32_0 = arith.constant 0 : i32
    return %c0_i32, %arg0 : i32, i32
  }
  func.func @transform_1(%arg0: i32) -> (i32, i32) {
    %c0_i32 = arith.constant 0 : i32
    %c0_i32_0 = arith.constant 0 : i32
    return %c0_i32, %arg0 : i32, i32
  }
}

</mosaic_0001>

<bundles_post_ra>
// kernel: tpu_custom_call.1
= control target key start
LH: loop header
LB: loop body
LE: loop exit
PB: predicated region body
PF: predicated region fallthrough
CT: control target
= control target key end

     0   :  { %6 = vsyncpa [#allocation3], 0  ;;  %s569_s0 = inlined_call_operand.hbm [shape: s32[1,256], index: 0, kind: input, shape index: {}]   ;;  %s570_s1 = inlined_call_operand.hbm [shape: f32[23,256], index: 1, kind: output, shape index: {}]  }
   0x1   :  { %8 = vsyncpa [#allocation3 + $0x1], 0 }
   0x2   :  { %9 = vsyncpa [#allocation4], 0 }
   0x3   :  { %11 = vsyncpa [#allocation4 + $0x1], 0  ;;  %s405_s6 = smov 0   ;;  %s407_s7 = smov 0  }
   0x4   :  { %s409_s8 = smov 0   ;;  %s411_s9 = smov 0  }
   0x5 LB: > { %s426_s10 = sadd.s32 4294967295, %s387_s9   ;;  %s232_s11 = sadd.s32 4294967294, %s387_s9   ;;  %s387_s9 = sphi %s411_s9, %s585_s9   ;;  %s383_s8 = sphi %s409_s8, %s584_s8   ;;  %s379_s7 = sphi %s407_s7, %s583_s7   ;;  %s375_s6 = sphi %s405_s6, %s582_s6  }
   0x6   : > { %s430_s12 = sadd.s32 1, %s387_s9   ;;  %s24_s13 = sadd.s32 1, %s383_s8 }
   0x7   : > { %s21_s14 = ssub.s32 %s387_s9, %s430_s12  ;;  %p31_p0 = scmp.ne.s32.totalorder %s383_s8, %s379_s7 }
   0x8   : > { %p22_p1 = scmp.eq.s32.totalorder %s21_s14, 0  ;;  %p32_p2 = scmp.eq.s32.totalorder %s387_s9, 0 }
   0x9   : > { %p37_p3 = scmp.ne.s32.totalorder %s379_s7, %s375_s6  ;;  %p38_p4 = scmp.eq.s32.totalorder %s426_s10, 0 }
   0xa   : > { %s442_s15 = scalar_select %p22_p1, %s383_s8, %s24_s13  }
   0xb   : > { %p444_p5 = por %p32_p2, %p31_p0  ;;  %p448_p6 = por %p38_p4, %p37_p3 }
   0xc   : > { %p61_p7 = scmp.eq.s32.totalorder %s426_s10, 1  ;;  %p67_p8 = scmp.eq.s32.totalorder %s232_s11, 1 }
   0xd   : > { %p253_p10 = scmp.lt.s32.totalorder %s387_s9, 2  ;;  %s87_s20 = sand.u32 1, %s383_s8  }
   0xe   : > { %p455_p11 = por %p61_p7, %p31_p0  ;;  %p459_p12 = por %p67_p8, %p37_p3 }
   0xf   : > { %s235_s21 = sshll.u32 %s387_s9, 4  ;;  %s90_s25 = scalar_lea.vmem [#allocation2], %s87_s20 }
  0x10   : > { %s574_s18 = scalar_select %p455_p11, 1, 0 }
  0x11   : > { %s575_s19 = scalar_select %p459_p12, 1, 0 }
  0x12   : > { %s468_s24 = scalar_lea.hbm %s569_s0, %s235_s21  ;;  %s97_s26 = sshll.u32 %s90_s25, 4  ;;  %s470_s26 = int_to_ptr.vmem [resolvable:$true] %s97_s26 }
  0x13   : > { %p474_p13 = pnand %p253_p10, %p444_p5  ;;  %s88_s28 = scalar_lea.sflag [#allocation3], %s87_s20 }
  0x14   : > { %s291_s29 = scalar_lea.hbm %s468_s24, 16  ;;  %s296_s3 = scalar_lea.hbm %s569_s0, 32 }
  0x15   : > { %p292_p2 = scmp.ne.s32.totalorder %s468_s24, %s291_s29  ;;  %p293_p3 = pneg %p474_p13 }
  0x16   : > { %p297_p5 = scmp.lt.u32.totalorder %s468_s24, %s569_s0  ;;  %p298_p8 = scmp.lt.u32.totalorder %s296_s3, %s291_s29 }
  0x17   : > { %p294_p4 = pnand %p293_p3, %p292_p2  ;;  %p300_p9 = scmp.lt.u32.totalorder %s291_s29, %s468_s24 }
  0x18   : > { %p299_p10 = por %p298_p8, %p297_p5 }
  0x19   : > { %p295_p7 = pneg %p294_p4 }
  0x1a   : > { %p301_p0 = por %p300_p9, %p299_p10 }
  0x1c   : > { %p302_p1 = pnand %p301_p0, %p295_p7 }
  0x1e   : > { %305 = shalt.err (!%p302_p1)
}
  0x1f   : > { %s306_s11 = scalar_lea.vmem %s470_s26, 16  ;;  %s389_s13 = smov [#allocation2]  }
  0x20   : > { %p307_p2 = scmp.ne.s32.totalorder %s470_s26, %s306_s11  ;;  %s311_s14 = sshll.u32 %s389_s13, 4  ;;  %s312_s14 = int_to_ptr.vmem [resolvable:$false] %s311_s14 }
  0x21   : > { %s313_s16 = scalar_lea.vmem %s312_s14, 32  ;;  %p314_p11 = scmp.lt.s32.totalorder %s470_s26, %s312_s14 }
  0x22   : > { %p309_p4 = pnand %p307_p2, %p293_p3  ;;  %p315_p5 = scmp.lt.s32.totalorder %s313_s16, %s306_s11 }
  0x24   : > { %p310_p12 = pneg %p309_p4  ;;  %p316_p8 = por %p315_p5, %p314_p11 }
  0x26   : > { %p317_p9 = pnand %p316_p8, %p310_p12 }
  0x28   : > { %320 = shalt.err (!%p317_p9)
}
  0x29   : > { %248 = dma.hbm_to_vmem [thread:$0]  (!%p474_p13), %s468_s24, 16, %s470_s26, %s88_s28  }
  0x2a   : > { %p577_p0 = scmp.lt.s32.totalorder %s387_s9, 3  ;;  %p578_p1 = scmp.ge.s32.totalorder %s387_s9, 1 }
  0x2c   : > { %p103_p3 = pnand %p578_p1, %p577_p0 }
  0x2d   : > { %s510_s20 = sand.u32 (!%p103_p3), 1, %s379_s7  }
  0x2e   : > { %106 = sbr.rel (%p103_p3) target bundleno = 82 (0x52), region = 24  ;;  %s109_s21 = scalar_lea.sflag (!%p103_p3), [#allocation3], %s510_s20 }
  0x2f   : > { %s111_s22 = scalar_lea.vmem (!%p103_p3), [#allocation2], %s510_s20 }
  0x35   : > { %366 = dma.done.wait (%p448_p6), %s109_s21, 16  }
  0x36   : > { %368 = vsyncadd (%p448_p6), %s109_s21, 4294967280  ;;  %v132_v0 = vlaneseq  ;;  %s240_s23 = smul.u32 24, %s510_s20  ;;  %v129_v3 = vld [vmem:[%s111_s22] sm:$0x1]  ;;  %s237_s24 = sshll.u32 %s426_s10, 7  ;;  %v390_v8 = vmov 0.0  }
  0x37   : > { %vm130_vm0 = vcmp.eq.s32.totalorder %v129_v3, 4294967295  ;;  %s523_s17 = scalar_lea.hbm %s570_s1, %s237_s24  ;;  %s150_s10 = scalar_lea.sflag [#allocation4], %s510_s20 }
  0x38   : > { %v133_v1 = vshrl.u32 %v132_v0, 7  ;;  %v131_v6 = vsel %vm130_vm0, 1, %v129_v3  ;;  %s128_s25 = scalar_lea.vmem [#allocation5], %s240_s23  ;;  %p579_p11 = scmp.ne.s32.totalorder %s574_s18, 0 }
  0x39   : > { %s162_s26 = sshll.u32 %s128_s25, 4  ;;  %s391_s30 = smov [#allocation5]   ;;  %s525_s26 = int_to_ptr.vmem [resolvable:$true] %s162_s26 }
  0x3a   : > { %v138_v2 = vsub.s32 0, %v133_v1  ;;  %v134_v4 = vadd.s32 8, %v133_v1  ;;  %v135_v5 = vadd.s32 16, %v133_v1  ;;  %s321_s29 = scalar_lea.vmem %s525_s26, 384  ;;  %s325_s2 = sshll.u32 %s391_s30, 4  ;;  %s326_s2 = int_to_ptr.vmem [resolvable:$false] %s325_s2 }
  0x3b   : > { %p322_p6 = scmp.ne.s32.totalorder %s525_s26, %s321_s29  ;;  %s327_s3 = scalar_lea.vmem %s326_s2, 768 }
  0x3c   : > { %v139_v7 = vrot.slane %v131_v6, %v138_v2  ;;  %p328_p7 = scmp.lt.s32.totalorder %s525_s26, %s326_s2  ;;  %p329_p10 = scmp.lt.s32.totalorder %s327_s3, %s321_s29 }
  0x3d   : > { %p323_p12 = pnand %p322_p6, %p579_p11 }
  0x3e   : > { %vm140_vm1 = vcmp.eq.s32.totalorder %v133_v1, %v139_v7  ;;  %vm141_vm2 = vcmp.eq.s32.totalorder %v134_v4, %v139_v7  ;;  %vm142_vm3 = vcmp.eq.s32.totalorder %v135_v5, %v139_v7  ;;  %p330_p2 = por %p329_p10, %p328_p7 }
  0x3f   : > { %v143_v9 = vsel %vm140_vm1, 1.0, %v390_v8  ;;  %v144_v10 = vsel %vm141_vm2, 1.0, %v390_v8  ;;  %v145_v11 = vsel %vm142_vm3, 1.0, %v390_v8  ;;  %p324_p13 = pneg %p323_p12 }
  0x40   : > { %146 = vst [vmem:[%s128_s25] sm:$0xff] %v143_v9  ;;  %147 = vst [vmem:[%s128_s25 + $0x8] sm:$0xff] %v144_v10 }
  0x41   : > { %148 = vst [vmem:[%s128_s25 + $0x10] sm:$0x7f] %v145_v11  ;;  %p331_p4 = pnand %p330_p2, %p324_p13 }
  0x43   : > { %334 = shalt.err (!%p331_p4)
}
  0x44   : > { %s335_s4 = scalar_lea.hbm %s523_s17, 384  ;;  %s339_s13 = scalar_lea.hbm %s570_s1, 768 }
  0x45   : > { %p336_p5 = scmp.ne.s32.totalorder %s523_s17, %s335_s4  ;;  %p340_p0 = scmp.lt.u32.totalorder %s523_s17, %s570_s1 }
  0x46   : > { %p341_p1 = scmp.lt.u32.totalorder %s339_s13, %s335_s4  ;;  %p343_p6 = scmp.lt.u32.totalorder %s335_s4, %s523_s17 }
  0x47   : > { %p337_p8 = pnand %p336_p5, %p579_p11 }
  0x48   : > { %p342_p3 = por %p341_p1, %p340_p0 }
  0x49   : > { %p338_p9 = pneg %p337_p8 }
  0x4a   : > { %p344_p12 = por %p343_p6, %p342_p3 }
  0x4c   : > { %p345_p13 = pnand %p344_p12, %p338_p9 }
  0x4e   : > { %348 = shalt.err (!%p345_p13)
}
  0x4f   : > { %s392_s21 = smov 128   ;;  %s393_s22 = smov 256  }
  0x50   : > { %s394_s23 = smov 8  }
  0x51   : > { %243 = dma.vmem_to_hbm [thread:$0]  (%p579_p11), %s525_s26, 384, %s523_s17, %s150_s10, %s392_s21, %s393_s22, %s394_s23  }
  0x52 PF: > { %s177_s24 = sand.u32 1, %s375_s6   ;;  %p580_p7 = scmp.ne.s32.totalorder %s575_s19, 0 }
  0x53   : > { %p581_p10 = scmp.ge.s32.totalorder %s387_s9, 2  ;;  %s178_s25 = scalar_lea.sflag [#allocation4], %s177_s24 }
  0x55   : > { %p250_p2 = pnand %p581_p10, %p580_p7 }
  0x57   : > { %370 = dma.done.wait (!%p250_p2), %s178_s25, 384  }
  0x58   : > { %372 = vsyncadd (!%p250_p2), %s178_s25, 4294966912  ;;  %p14_p4 = scmp.ge.s32.totalorder %s430_s12, 4   ;;  %s582_s6 = smov %s379_s7 }
  0x59   : > { %s583_s7 = smov %s383_s8  ;;  %s584_s8 = smov %s442_s15 }
  0x5a   : > { %s585_s9 = smov %s430_s12  ;;  %16 = sbr.rel (!%p14_p4) target bundleno = 5 (0x5), region = 69 }
  0x61   :  { %183 = vsyncpa [#allocation3], 1 }
  0x62   :  { %185 = vsyncpa [#allocation3 + $0x1], 1 }
  0x63   :  { %186 = vsyncpa [#allocation4], 1 }
  0x64   :  { %188 = vsyncpa [#allocation4 + $0x1], 1 }

</bundles_post_ra>
